<compile_context>
chip_gen: v7x
topology: tpu7x:2x2x1
jax: 0.10.0
libtpu: 0.0.40
codegen_flags: <defaults>
</compile_context>

<pallas_src>
import jax
import jax.numpy as jnp
from jax.experimental import pallas as pl
from jax.experimental.pallas import tpu as pltpu

EPS = 1e-5            # PyTorch nn.LayerNorm default
NEG_INF = -1e30       # finite "minus infinity" (NaN-safe if a row is masked)
LOG2E = 1.4426950408889634


def _vmem_limit_bytes():
    """~75% of physical VMEM (96 MiB on v5e/v6e, 48 MiB on v7x); safe fallback."""
    try:
        info = pltpu.get_tpu_info()
        for name in ("vmem_capacity_bytes", "vmem_size_bytes", "vmem_bytes"):
            cap = getattr(info, name, None)
            if cap:
                return int(min(int(cap) * 3 // 4, 112 * 1024 * 1024))
    except Exception:
        pass
    return 32 * 1024 * 1024


def _layernorm(x, g, b):
    mean = jnp.mean(x, axis=-1, keepdims=True)
    var = jnp.mean((x - mean) ** 2, axis=-1, keepdims=True)
    return (x - mean) * jax.lax.rsqrt(var + EPS) * g + b


# --------------------------------------------------------------------------
# Kernel A: xn = LN1(x); qkv = xn @ [wq*scale*log2e | wk | wv];
#           emit q/k/v head-major (B, H, T, hs), bf16.
# --------------------------------------------------------------------------
def _qkv_kernel(x_ref, g_ref, b_ref, w_ref, q_ref, k_ref, v_ref):
    H, hs = q_ref.shape[1], q_ref.shape[3]
    C = H * hs
    xn = _layernorm(x_ref[0].astype(jnp.float32), g_ref[...], b_ref[...])
    qkv = jnp.dot(xn.astype(jnp.bfloat16), w_ref[...],
                  preferred_element_type=jnp.float32)          # (tq, 3C)
    # In-kernel head swizzle (once per token): (tq, 3C) -> 3 x (H, tq, hs).
    for h in range(H):
        lo = h * hs
        hi = (h + 1) * hs
        q_ref[0, h] = qkv[:, lo:hi].astype(q_ref.dtype)
        k_ref[0, h] = qkv[:, C + lo:C + hi].astype(k_ref.dtype)
        v_ref[0, h] = qkv[:, 2 * C + lo:2 * C + hi].astype(v_ref.dtype)


# --------------------------------------------------------------------------
# Kernel B: flash attention (online softmax over KV tiles, exp2 domain).
#           Output: head-concat lane-dense (B, T, C) bf16 (unnormalized by wp).
# --------------------------------------------------------------------------
def _flash_attn_kernel(q_ref, k_ref, v_ref, o_ref, m_sc, l_sc, acc_sc):
    qi = pl.program_id(1)
    ki = pl.program_id(2)
    H, tq = q_ref.shape[1], q_ref.shape[2]
    tk = k_ref.shape[2]
    q_start = qi * tq
    k_start = ki * tk

    @pl.when(ki == 0)
    def _():
        m_sc[...] = jnp.full(m_sc.shape, NEG_INF, m_sc.dtype)
        l_sc[...] = jnp.zeros(l_sc.shape, l_sc.dtype)
        acc_sc[...] = jnp.zeros(acc_sc.shape, acc_sc.dtype)

    # Skip KV blocks that lie entirely above the causal diagonal.
    @pl.when(k_start <= q_start + (tq - 1))
    def _():
        q = q_ref[0]                   # (H, tq, hs) bf16, scale*log2e folded in
        k = k_ref[0]                   # (H, tk, hs) bf16
        v = v_ref[0]                   # (H, tk, hs) bf16
        s = jnp.einsum('hqd,hkd->hqk', q, k,
                       preferred_element_type=jnp.float32)     # log2 domain

        def online_update(s_blk):
            m_prev = m_sc[...]
            m_new = jnp.maximum(m_prev, jnp.max(s_blk, axis=-1, keepdims=True))
            alpha = jnp.exp2(m_prev - m_new)
            p = jnp.exp2(s_blk - m_new)
            l_sc[...] = alpha * l_sc[...] + jnp.sum(p, axis=-1, keepdims=True)
            acc_sc[...] = alpha * acc_sc[...] + jnp.einsum(
                'hqk,hkd->hqd', p.astype(v.dtype), v,
                preferred_element_type=jnp.float32)
            m_sc[...] = m_new

        # Mask only diagonal-straddling blocks; interior blocks skip the mask.
        straddles = k_start + (tk - 1) > q_start

        @pl.when(straddles)
        def _():
            q_pos = q_start + jax.lax.broadcasted_iota(jnp.int32, (tq, tk), 0)
            k_pos = k_start + jax.lax.broadcasted_iota(jnp.int32, (tq, tk), 1)
            online_update(jnp.where((q_pos >= k_pos)[None, :, :], s, NEG_INF))

        @pl.when(jnp.logical_not(straddles))
        def _():
            online_update(s)

    @pl.when(ki == pl.num_programs(2) - 1)
    def _():
        att = acc_sc[...] * pl.reciprocal(l_sc[...], approx=True)  # (H, tq, hs)
        # Head-concat to lane-dense (tq, C): downstream projection becomes one
        # full-K MXU matmul and the output store is unmasked.
        att_cat = jnp.concatenate([att[h] for h in range(H)], axis=-1)
        o_ref[0] = att_cat.astype(o_ref.dtype)


# --------------------------------------------------------------------------
# Kernel C: out-projection + residual + LN2 + FFN(ReLU, 4x) + residual.
# --------------------------------------------------------------------------
def _proj_ffn_kernel(x_ref, att_ref, wp_ref, bp_ref, g2_ref, b2_ref,
                     w1_ref, b1_ref, w2_ref, b2b_ref, out_ref):
    # Single full-K (tq, C) @ (C, C) projection (heads already concatenated).
    proj = jnp.dot(att_ref[0], wp_ref[...],
                   preferred_element_type=jnp.float32) + bp_ref[...]
    y = x_ref[0].astype(jnp.float32) + proj                    # residual 1
    xn2 = _layernorm(y, g2_ref[...], b2_ref[...])
    h1 = jnp.dot(xn2.astype(jnp.bfloat16), w1_ref[...],
                 preferred_element_type=jnp.float32) + b1_ref[...]
    h1 = jnp.maximum(h1, 0.0)
    ff = jnp.dot(h1.astype(jnp.bfloat16), w2_ref[...],
                 preferred_element_type=jnp.float32) + b2b_ref[...]
    out_ref[0] = (y + ff).astype(out_ref.dtype)                # residual 2


# --------------------------------------------------------------------------
# Wrapper
# --------------------------------------------------------------------------
def block_forward(x, params, n_head, *, tile_q=256, tile_k=256):
    B, T, C = x.shape
    H = n_head
    hs = C // H
    Hf = params["w1"].shape[1]            # FFN hidden (4*C)
    tq = min(tile_q, T)
    tk = min(tile_k, T)
    assert T % tq == 0 and T % tk == 0, "T must be divisible by the tile sizes"
    nq, nk = T // tq, T // tk

    bf16, f32 = jnp.bfloat16, jnp.float32
    vmem_limit = _vmem_limit_bytes()

    # Fused QKV weight; fold 1/sqrt(head_size)*log2(e) into the Q columns.
    scale = (hs ** -0.5) * LOG2E
    wqkv = jnp.concatenate(
        [params["wq"].astype(f32) * scale,
         params["wk"].astype(f32),
         params["wv"].astype(f32)], axis=1).astype(bf16)          # (C, 3C)

    # ---- Kernel A: LN1 + fused QKV projection, head-major q/k/v out ----
    q, k, v = pl.pallas_call(
        _qkv_kernel,
        out_shape=(jax.ShapeDtypeStruct((B, H, T, hs), bf16),
                   jax.ShapeDtypeStruct((B, H, T, hs), bf16),
                   jax.ShapeDtypeStruct((B, H, T, hs), bf16)),
        grid=(B, nq),
        in_specs=[
            pl.BlockSpec((1, tq, C), lambda b, i: (b, i, 0)),
            pl.BlockSpec((1, C), lambda b, i: (0, 0)),
            pl.BlockSpec((1, C), lambda b, i: (0, 0)),
            pl.BlockSpec((C, 3 * C), lambda b, i: (0, 0)),
        ],
        out_specs=(pl.BlockSpec((1, H, tq, hs), lambda b, i: (b, 0, i, 0)),
                   pl.BlockSpec((1, H, tq, hs), lambda b, i: (b, 0, i, 0)),
                   pl.BlockSpec((1, H, tq, hs), lambda b, i: (b, 0, i, 0))),
        compiler_params=pltpu.CompilerParams(
            dimension_semantics=("parallel", "parallel"),
            vmem_limit_bytes=vmem_limit),
    )(x, params["ln1_g"], params["ln1_b"], wqkv)

    # ---- Kernel B: flash attention ----
    att = pl.pallas_call(
        _flash_attn_kernel,
        out_shape=jax.ShapeDtypeStruct((B, T, C), bf16),
        grid=(B, nq, nk),
        in_specs=[
            pl.BlockSpec((1, H, tq, hs), lambda b, i, j: (b, 0, i, 0)),
            pl.BlockSpec((1, H, tk, hs), lambda b, i, j: (b, 0, j, 0)),
            pl.BlockSpec((1, H, tk, hs), lambda b, i, j: (b, 0, j, 0)),
        ],
        out_specs=pl.BlockSpec((1, tq, C), lambda b, i, j: (b, i, 0)),
        scratch_shapes=[
            pltpu.VMEM((H, tq, 1), jnp.float32),    # running max (log2 domain)
            pltpu.VMEM((H, tq, 1), jnp.float32),    # running denominator
            pltpu.VMEM((H, tq, hs), jnp.float32),   # running numerator
        ],
        compiler_params=pltpu.CompilerParams(
            dimension_semantics=("parallel", "parallel", "arbitrary"),
            vmem_limit_bytes=vmem_limit),
    )(q, k, v)

    # ---- Kernel C: out-projection + residual + LN2 + FFN + residual ----
    def cspec(shape):
        zeros = (0,) * len(shape)
        return pl.BlockSpec(shape, lambda b, i: zeros)

    out = pl.pallas_call(
        _proj_ffn_kernel,
        out_shape=jax.ShapeDtypeStruct((B, T, C), x.dtype),
        grid=(B, nq),
        in_specs=[
            pl.BlockSpec((1, tq, C), lambda b, i: (b, i, 0)),   # x (residual)
            pl.BlockSpec((1, tq, C), lambda b, i: (b, i, 0)),   # att (head-concat)
            cspec((C, C)),        # wp
            cspec((1, C)),        # bp
            cspec((1, C)),        # ln2_g
            cspec((1, C)),        # ln2_b
            cspec((C, Hf)),       # w1
            cspec((1, Hf)),       # b1
            cspec((Hf, C)),       # w2
            cspec((1, C)),        # b2
        ],
        out_specs=pl.BlockSpec((1, tq, C), lambda b, i: (b, i, 0)),
        compiler_params=pltpu.CompilerParams(
            dimension_semantics=("parallel", "parallel"),
            vmem_limit_bytes=vmem_limit),
    )(x, att, params["wp"].astype(bf16), params["bp"],
      params["ln2_g"], params["ln2_b"],
      params["w1"].astype(bf16), params["b1"],
      params["w2"].astype(bf16), params["b2"])
    return out


# --------------------------------------------------------------------------
# Pure-JAX reference (mirrors the PyTorch Block forward, eval mode, f32)
# --------------------------------------------------------------------------
def block_reference(x, params, n_head):
    B, T, C = x.shape
    hs = C // n_head
    p = params

    def ln(z, g, b):
        m = jnp.mean(z, axis=-1, keepdims=True)
        v = jnp.mean((z - m) ** 2, axis=-1, keepdims=True)
        return (z - m) / jnp.sqrt(v + EPS) * g[0] + b[0]

    xn = ln(x, p["ln1_g"], p["ln1_b"])
    q = xn @ p["wq"]
    k = xn @ p["wk"]
    v = xn @ p["wv"]
    mask = jnp.tril(jnp.ones((T, T), bool))
    outs = []
    for h in range(n_head):
        s = h * hs
        wei = q[:, :, s:s + hs] @ jnp.swapaxes(k[:, :, s:s + hs], -1, -2) * hs ** -0.5
        wei = jnp.where(mask, wei, -jnp.inf)
        wei = jax.nn.softmax(wei, axis=-1)
        outs.append(wei @ v[:, :, s:s + hs])
    att = jnp.concatenate(outs, axis=-1) @ p["wp"] + p["bp"][0]
    x = x + att
    xn2 = ln(x, p["ln2_g"], p["ln2_b"])
    ff = jnp.maximum(xn2 @ p["w1"] + p["b1"][0], 0.0) @ p["w2"] + p["b2"][0]
    return x + ff


def init_params(key, n_embd):
    C = n_embd
    Hf = 4 * n_embd          # FeedForward intermediate_n_embd = 4
    keys = jax.random.split(key, 8)
    s = 0.02
    return {
        "ln1_g": jnp.ones((1, C), jnp.float32),
        "ln1_b": jnp.zeros((1, C), jnp.float32),
        "wq": s * jax.random.normal(keys[0], (C, C), jnp.float32),
        "wk": s * jax.random.normal(keys[1], (C, C), jnp.float32),
        "wv": s * jax.random.normal(keys[2], (C, C), jnp.float32),
        "wp": s * jax.random.normal(keys[3], (C, C), jnp.float32),
        "bp": s * jax.random.normal(keys[4], (1, C), jnp.float32),
        "ln2_g": jnp.ones((1, C), jnp.float32),
        "ln2_b": jnp.zeros((1, C), jnp.float32),
        "w1": s * jax.random.normal(keys[5], (C, Hf), jnp.float32),
        "b1": jnp.zeros((1, Hf), jnp.float32),
        "w2": s * jax.random.normal(keys[6], (Hf, C), jnp.float32),
        "b2": s * jax.random.normal(keys[7], (1, C), jnp.float32),
    }


if __name__ == "__main__":
    B, T, n_embd, n_head = 2, 8, 32, 4   # head_size = 8
    key = jax.random.PRNGKey(0)
    kx, kp = jax.random.split(key)
    x = jax.random.normal(kx, (B, T, n_embd), jnp.float32)
    params = init_params(kp, n_embd)

    out = jax.block_until_ready(block_forward(x, params, n_head))
    ref = block_reference(x, params, n_head)

    assert out.shape == (B, T, n_embd)
    max_err = float(jnp.max(jnp.abs(out - ref)))
    # bf16 matmul operands + approx reciprocal -> loosened tolerance vs f32 ref
    assert jnp.allclose(out, ref, atol=2e-2, rtol=2e-2), \
        f"mismatch vs reference (max abs err {max_err})"
    print("KERNEL_OK")
</pallas_src>

<mosaic_0001>
module attributes {stable_mosaic.version = 11 : i64} {
  func.func @_qkv_kernel(%arg0: i32, %arg1: i32, %arg2: memref<1x8x32xf32, #tpu.memory_space<vmem>>, %arg3: memref<1x32xf32, #tpu.memory_space<vmem>>, %arg4: memref<1x32xf32, #tpu.memory_space<vmem>>, %arg5: memref<32x96xbf16, #tpu.memory_space<vmem>>, %arg6: memref<1x4x8x8xbf16, #tpu.memory_space<vmem>>, %arg7: memref<1x4x8x8xbf16, #tpu.memory_space<vmem>>, %arg8: memref<1x4x8x8xbf16, #tpu.memory_space<vmem>>) attributes {dimension_semantics = [#tpu.dimension_semantics<parallel>, #tpu.dimension_semantics<parallel>], iteration_bounds = array<i64: 2, 1>, scalar_prefetch = 0 : i64, scratch_operands = 0 : i64, tpu.core_type = #tpu.core_type<tc>, window_params = [{transform_indices = @transform_0, window_bounds = array<i64: 1, 8, 32>}, {pipeline_mode = #tpu.pipeline_mode<synchronous>, transform_indices = @transform_1, window_bounds = array<i64: 1, 32>}, {pipeline_mode = #tpu.pipeline_mode<synchronous>, transform_indices = @transform_2, window_bounds = array<i64: 1, 32>}, {pipeline_mode = #tpu.pipeline_mode<synchronous>, transform_indices = @transform_3, window_bounds = array<i64: 32, 96>}, {transform_indices = @transform_4, window_bounds = array<i64: 1, 4, 8, 8>}, {transform_indices = @transform_5, window_bounds = array<i64: 1, 4, 8, 8>}, {transform_indices = @transform_6, window_bounds = array<i64: 1, 4, 8, 8>}]} {
    %c0 = arith.constant 0 : index
    %c0_0 = arith.constant 0 : index
    %c0_1 = arith.constant 0 : index
    %0 = vector.load %arg2[%c0, %c0_0, %c0_1] : memref<1x8x32xf32, #tpu.memory_space<vmem>>, vector<1x8x32xf32>
    %1 = vector.shape_cast %0 : vector<1x8x32xf32> to vector<8x32xf32>
    %c0_2 = arith.constant 0 : index
    %c0_3 = arith.constant 0 : index
    %2 = vector.load %arg3[%c0_2, %c0_3] : memref<1x32xf32, #tpu.memory_space<vmem>>, vector<1x32xf32>
    %c0_4 = arith.constant 0 : index
    %c0_5 = arith.constant 0 : index
    %3 = vector.load %arg4[%c0_4, %c0_5] : memref<1x32xf32, #tpu.memory_space<vmem>>, vector<1x32xf32>
    %cst = arith.constant dense<0.000000e+00> : vector<8xf32>
    %4 = vector.multi_reduction <add>, %1, %cst [1] : vector<8x32xf32> to vector<8xf32>
    %5 = vector.shape_cast %4 : vector<8xf32> to vector<8x1xf32>
    %cst_6 = arith.constant 3.200000e+01 : f32
    %6 = vector.broadcast %cst_6 : f32 to vector<8x1xf32>
    %7 = arith.divf %5, %6 : vector<8x1xf32>
    %8 = vector.broadcast %7 : vector<8x1xf32> to vector<8x32xf32>
    %9 = arith.subf %1, %8 : vector<8x32xf32>
    %10 = arith.mulf %9, %9 : vector<8x32xf32>
    %cst_7 = arith.constant dense<0.000000e+00> : vector<8xf32>
    %11 = vector.multi_reduction <add>, %10, %cst_7 [1] : vector<8x32xf32> to vector<8xf32>
    %12 = vector.shape_cast %11 : vector<8xf32> to vector<8x1xf32>
    %cst_8 = arith.constant 3.200000e+01 : f32
    %13 = vector.broadcast %cst_8 : f32 to vector<8x1xf32>
    %14 = arith.divf %12, %13 : vector<8x1xf32>
    %15 = vector.broadcast %7 : vector<8x1xf32> to vector<8x32xf32>
    %16 = arith.subf %1, %15 : vector<8x32xf32>
    %cst_9 = arith.constant 9.99999974E-6 : f32
    %17 = vector.broadcast %cst_9 : f32 to vector<8x1xf32>
    %18 = arith.addf %14, %17 : vector<8x1xf32>
    %19 = math.rsqrt %18 : vector<8x1xf32>
    %20 = vector.broadcast %19 : vector<8x1xf32> to vector<8x32xf32>
    %21 = arith.mulf %16, %20 : vector<8x32xf32>
    %22 = vector.broadcast %2 : vector<1x32xf32> to vector<8x32xf32>
    %23 = arith.mulf %21, %22 : vector<8x32xf32>
    %24 = vector.broadcast %3 : vector<1x32xf32> to vector<8x32xf32>
    %25 = arith.addf %23, %24 : vector<8x32xf32>
    %26 = arith.truncf %25 : vector<8x32xf32> to vector<8x32xbf16>
    %c0_10 = arith.constant 0 : index
    %c0_11 = arith.constant 0 : index
    %27 = vector.load %arg5[%c0_10, %c0_11] : memref<32x96xbf16, #tpu.memory_space<vmem>>, vector<32x96xbf16>
    %cst_12 = arith.constant dense<0.000000e+00> : vector<8x96xf32>
    %28 = tpu.matmul %26, %27, %cst_12 {dimension_numbers = #tpu.dot_dimension_numbers<[1], [0], [0], [1], [0, 0, 1, 1], [], []>} : vector<8x32xbf16>, vector<32x96xbf16>, vector<8x96xf32> -> vector<8x96xf32>
    %29 = vector.extract_strided_slice %28 {offsets = [0, 0], sizes = [8, 8], strides = [1, 1]} : vector<8x96xf32> to vector<8x8xf32>
    %30 = arith.truncf %29 : vector<8x8xf32> to vector<8x8xbf16>
    %c0_13 = arith.constant 0 : index
    %c0_14 = arith.constant 0 : index
    %c0_15 = arith.constant 0 : index
    %c0_16 = arith.constant 0 : index
    %31 = vector.load %arg6[%c0_13, %c0_14, %c0_15, %c0_16] : memref<1x4x8x8xbf16, #tpu.memory_space<vmem>>, vector<1x1x8x8xbf16>
    %32 = vector.shape_cast %31 : vector<1x1x8x8xbf16> to vector<8x8xbf16>
    %33 = vector.shape_cast %30 : vector<8x8xbf16> to vector<1x1x8x8xbf16>
    tpu.vector_store %arg6[%c0_13, %c0_14, %c0_15, %c0_16], %33 {strides = array<i32>} : memref<1x4x8x8xbf16, #tpu.memory_space<vmem>>, vector<1x1x8x8xbf16>,
    %34 = vector.extract_strided_slice %28 {offsets = [0, 32], sizes = [8, 8], strides = [1, 1]} : vector<8x96xf32> to vector<8x8xf32>
    %35 = arith.truncf %34 : vector<8x8xf32> to vector<8x8xbf16>
    %c0_17 = arith.constant 0 : index
    %c0_18 = arith.constant 0 : index
    %c0_19 = arith.constant 0 : index
    %c0_20 = arith.constant 0 : index
    %36 = vector.load %arg7[%c0_17, %c0_18, %c0_19, %c0_20] : memref<1x4x8x8xbf16, #tpu.memory_space<vmem>>, vector<1x1x8x8xbf16>
    %37 = vector.shape_cast %36 : vector<1x1x8x8xbf16> to vector<8x8xbf16>
    %38 = vector.shape_cast %35 : vector<8x8xbf16> to vector<1x1x8x8xbf16>
    tpu.vector_store %arg7[%c0_17, %c0_18, %c0_19, %c0_20], %38 {strides = array<i32>} : memref<1x4x8x8xbf16, #tpu.memory_space<vmem>>, vector<1x1x8x8xbf16>,
    %39 = vector.extract_strided_slice %28 {offsets = [0, 64], sizes = [8, 8], strides = [1, 1]} : vector<8x96xf32> to vector<8x8xf32>
    %40 = arith.truncf %39 : vector<8x8xf32> to vector<8x8xbf16>
    %c0_21 = arith.constant 0 : index
    %c0_22 = arith.constant 0 : index
    %c0_23 = arith.constant 0 : index
    %c0_24 = arith.constant 0 : index
    %41 = vector.load %arg8[%c0_21, %c0_22, %c0_23, %c0_24] : memref<1x4x8x8xbf16, #tpu.memory_space<vmem>>, vector<1x1x8x8xbf16>
    %42 = vector.shape_cast %41 : vector<1x1x8x8xbf16> to vector<8x8xbf16>
    %43 = vector.shape_cast %40 : vector<8x8xbf16> to vector<1x1x8x8xbf16>
    tpu.vector_store %arg8[%c0_21, %c0_22, %c0_23, %c0_24], %43 {strides = array<i32>} : memref<1x4x8x8xbf16, #tpu.memory_space<vmem>>, vector<1x1x8x8xbf16>,
    %44 = vector.extract_strided_slice %28 {offsets = [0, 8], sizes = [8, 8], strides = [1, 1]} : vector<8x96xf32> to vector<8x8xf32>
    %45 = arith.truncf %44 : vector<8x8xf32> to vector<8x8xbf16>
    %c0_25 = arith.constant 0 : index
    %c1 = arith.constant 1 : index
    %c0_26 = arith.constant 0 : index
    %c0_27 = arith.constant 0 : index
    %46 = vector.load %arg6[%c0_25, %c1, %c0_26, %c0_27] : memref<1x4x8x8xbf16, #tpu.memory_space<vmem>>, vector<1x1x8x8xbf16>
    %47 = vector.shape_cast %46 : vector<1x1x8x8xbf16> to vector<8x8xbf16>
    %48 = vector.shape_cast %45 : vector<8x8xbf16> to vector<1x1x8x8xbf16>
    tpu.vector_store %arg6[%c0_25, %c1, %c0_26, %c0_27], %48 {strides = array<i32>} : memref<1x4x8x8xbf16, #tpu.memory_space<vmem>>, vector<1x1x8x8xbf16>,
    %49 = vector.extract_strided_slice %28 {offsets = [0, 40], sizes = [8, 8], strides = [1, 1]} : vector<8x96xf32> to vector<8x8xf32>
    %50 = arith.truncf %49 : vector<8x8xf32> to vector<8x8xbf16>
    %c0_28 = arith.constant 0 : index
    %c1_29 = arith.constant 1 : index
    %c0_30 = arith.constant 0 : index
    %c0_31 = arith.constant 0 : index
    %51 = vector.load %arg7[%c0_28, %c1_29, %c0_30, %c0_31] : memref<1x4x8x8xbf16, #tpu.memory_space<vmem>>, vector<1x1x8x8xbf16>
    %52 = vector.shape_cast %51 : vector<1x1x8x8xbf16> to vector<8x8xbf16>
    %53 = vector.shape_cast %50 : vector<8x8xbf16> to vector<1x1x8x8xbf16>
    tpu.vector_store %arg7[%c0_28, %c1_29, %c0_30, %c0_31], %53 {strides = array<i32>} : memref<1x4x8x8xbf16, #tpu.memory_space<vmem>>, vector<1x1x8x8xbf16>,
    %54 = vector.extract_strided_slice %28 {offsets = [0, 72], sizes = [8, 8], strides = [1, 1]} : vector<8x96xf32> to vector<8x8xf32>
    %55 = arith.truncf %54 : vector<8x8xf32> to vector<8x8xbf16>
    %c0_32 = arith.constant 0 : index
    %c1_33 = arith.constant 1 : index
    %c0_34 = arith.constant 0 : index
    %c0_35 = arith.constant 0 : index
    %56 = vector.load %arg8[%c0_32, %c1_33, %c0_34, %c0_35] : memref<1x4x8x8xbf16, #tpu.memory_space<vmem>>, vector<1x1x8x8xbf16>
    %57 = vector.shape_cast %56 : vector<1x1x8x8xbf16> to vector<8x8xbf16>
    %58 = vector.shape_cast %55 : vector<8x8xbf16> to vector<1x1x8x8xbf16>
    tpu.vector_store %arg8[%c0_32, %c1_33, %c0_34, %c0_35], %58 {strides = array<i32>} : memref<1x4x8x8xbf16, #tpu.memory_space<vmem>>, vector<1x1x8x8xbf16>,
    %59 = vector.extract_strided_slice %28 {offsets = [0, 16], sizes = [8, 8], strides = [1, 1]} : vector<8x96xf32> to vector<8x8xf32>
    %60 = arith.truncf %59 : vector<8x8xf32> to vector<8x8xbf16>
    %c0_36 = arith.constant 0 : index
    %c2 = arith.constant 2 : index
    %c0_37 = arith.constant 0 : index
    %c0_38 = arith.constant 0 : index
    %61 = vector.load %arg6[%c0_36, %c2, %c0_37, %c0_38] : memref<1x4x8x8xbf16, #tpu.memory_space<vmem>>, vector<1x1x8x8xbf16>
    %62 = vector.shape_cast %61 : vector<1x1x8x8xbf16> to vector<8x8xbf16>
    %63 = vector.shape_cast %60 : vector<8x8xbf16> to vector<1x1x8x8xbf16>
    tpu.vector_store %arg6[%c0_36, %c2, %c0_37, %c0_38], %63 {strides = array<i32>} : memref<1x4x8x8xbf16, #tpu.memory_space<vmem>>, vector<1x1x8x8xbf16>,
    %64 = vector.extract_strided_slice %28 {offsets = [0, 48], sizes = [8, 8], strides = [1, 1]} : vector<8x96xf32> to vector<8x8xf32>
    %65 = arith.truncf %64 : vector<8x8xf32> to vector<8x8xbf16>
    %c0_39 = arith.constant 0 : index
    %c2_40 = arith.constant 2 : index
    %c0_41 = arith.constant 0 : index
    %c0_42 = arith.constant 0 : index
    %66 = vector.load %arg7[%c0_39, %c2_40, %c0_41, %c0_42] : memref<1x4x8x8xbf16, #tpu.memory_space<vmem>>, vector<1x1x8x8xbf16>
    %67 = vector.shape_cast %66 : vector<1x1x8x8xbf16> to vector<8x8xbf16>
    %68 = vector.shape_cast %65 : vector<8x8xbf16> to vector<1x1x8x8xbf16>
    tpu.vector_store %arg7[%c0_39, %c2_40, %c0_41, %c0_42], %68 {strides = array<i32>} : memref<1x4x8x8xbf16, #tpu.memory_space<vmem>>, vector<1x1x8x8xbf16>,
    %69 = vector.extract_strided_slice %28 {offsets = [0, 80], sizes = [8, 8], strides = [1, 1]} : vector<8x96xf32> to vector<8x8xf32>
    %70 = arith.truncf %69 : vector<8x8xf32> to vector<8x8xbf16>
    %c0_43 = arith.constant 0 : index
    %c2_44 = arith.constant 2 : index
    %c0_45 = arith.constant 0 : index
    %c0_46 = arith.constant 0 : index
    %71 = vector.load %arg8[%c0_43, %c2_44, %c0_45, %c0_46] : memref<1x4x8x8xbf16, #tpu.memory_space<vmem>>, vector<1x1x8x8xbf16>
    %72 = vector.shape_cast %71 : vector<1x1x8x8xbf16> to vector<8x8xbf16>
    %73 = vector.shape_cast %70 : vector<8x8xbf16> to vector<1x1x8x8xbf16>
    tpu.vector_store %arg8[%c0_43, %c2_44, %c0_45, %c0_46], %73 {strides = array<i32>} : memref<1x4x8x8xbf16, #tpu.memory_space<vmem>>, vector<1x1x8x8xbf16>,
    %74 = vector.extract_strided_slice %28 {offsets = [0, 24], sizes = [8, 8], strides = [1, 1]} : vector<8x96xf32> to vector<8x8xf32>
    %75 = arith.truncf %74 : vector<8x8xf32> to vector<8x8xbf16>
    %c0_47 = arith.constant 0 : index
    %c3 = arith.constant 3 : index
    %c0_48 = arith.constant 0 : index
    %c0_49 = arith.constant 0 : index
    %76 = vector.load %arg6[%c0_47, %c3, %c0_48, %c0_49] : memref<1x4x8x8xbf16, #tpu.memory_space<vmem>>, vector<1x1x8x8xbf16>
    %77 = vector.shape_cast %76 : vector<1x1x8x8xbf16> to vector<8x8xbf16>
    %78 = vector.shape_cast %75 : vector<8x8xbf16> to vector<1x1x8x8xbf16>
    tpu.vector_store %arg6[%c0_47, %c3, %c0_48, %c0_49], %78 {strides = array<i32>} : memref<1x4x8x8xbf16, #tpu.memory_space<vmem>>, vector<1x1x8x8xbf16>,
    %79 = vector.extract_strided_slice %28 {offsets = [0, 56], sizes = [8, 8], strides = [1, 1]} : vector<8x96xf32> to vector<8x8xf32>
    %80 = arith.truncf %79 : vector<8x8xf32> to vector<8x8xbf16>
    %c0_50 = arith.constant 0 : index
    %c3_51 = arith.constant 3 : index
    %c0_52 = arith.constant 0 : index
    %c0_53 = arith.constant 0 : index
    %81 = vector.load %arg7[%c0_50, %c3_51, %c0_52, %c0_53] : memref<1x4x8x8xbf16, #tpu.memory_space<vmem>>, vector<1x1x8x8xbf16>
    %82 = vector.shape_cast %81 : vector<1x1x8x8xbf16> to vector<8x8xbf16>
    %83 = vector.shape_cast %80 : vector<8x8xbf16> to vector<1x1x8x8xbf16>
    tpu.vector_store %arg7[%c0_50, %c3_51, %c0_52, %c0_53], %83 {strides = array<i32>} : memref<1x4x8x8xbf16, #tpu.memory_space<vmem>>, vector<1x1x8x8xbf16>,
    %84 = vector.extract_strided_slice %28 {offsets = [0, 88], sizes = [8, 8], strides = [1, 1]} : vector<8x96xf32> to vector<8x8xf32>
    %85 = arith.truncf %84 : vector<8x8xf32> to vector<8x8xbf16>
    %c0_54 = arith.constant 0 : index
    %c3_55 = arith.constant 3 : index
    %c0_56 = arith.constant 0 : index
    %c0_57 = arith.constant 0 : index
    %86 = vector.load %arg8[%c0_54, %c3_55, %c0_56, %c0_57] : memref<1x4x8x8xbf16, #tpu.memory_space<vmem>>, vector<1x1x8x8xbf16>
    %87 = vector.shape_cast %86 : vector<1x1x8x8xbf16> to vector<8x8xbf16>
    %88 = vector.shape_cast %85 : vector<8x8xbf16> to vector<1x1x8x8xbf16>
    tpu.vector_store %arg8[%c0_54, %c3_55, %c0_56, %c0_57], %88 {strides = array<i32>} : memref<1x4x8x8xbf16, #tpu.memory_space<vmem>>, vector<1x1x8x8xbf16>,
    return
  }
  func.func @transform_0(%arg0: i32, %arg1: i32) -> (i32, i32, i32) {
    %c0_i32 = arith.constant 0 : i32
    %c0_i32_0 = arith.constant 0 : i32
    return %arg0, %arg1, %c0_i32 : i32, i32, i32
  }
  func.func @transform_1(%arg0: i32, %arg1: i32) -> (i32, i32) {
    %c0_i32 = arith.constant 0 : i32
    %c0_i32_0 = arith.constant 0 : i32
    %c0_i32_1 = arith.constant 0 : i32
    return %c0_i32, %c0_i32_0 : i32, i32
  }
  func.func @transform_2(%arg0: i32, %arg1: i32) -> (i32, i32) {
    %c0_i32 = arith.constant 0 : i32
    %c0_i32_0 = arith.constant 0 : i32
    %c0_i32_1 = arith.constant 0 : i32
    return %c0_i32, %c0_i32_0 : i32, i32
  }
  func.func @transform_3(%arg0: i32, %arg1: i32) -> (i32, i32) {
    %c0_i32 = arith.constant 0 : i32
    %c0_i32_0 = arith.constant 0 : i32
    %c0_i32_1 = arith.constant 0 : i32
    return %c0_i32, %c0_i32_0 : i32, i32
  }
  func.func @transform_4(%arg0: i32, %arg1: i32) -> (i32, i32, i32, i32) {
    %c0_i32 = arith.constant 0 : i32
    %c0_i32_0 = arith.constant 0 : i32
    %c0_i32_1 = arith.constant 0 : i32
    return %arg0, %c0_i32, %arg1, %c0_i32_0 : i32, i32, i32, i32
  }
  func.func @transform_5(%arg0: i32, %arg1: i32) -> (i32, i32, i32, i32) {
    %c0_i32 = arith.constant 0 : i32
    %c0_i32_0 = arith.constant 0 : i32
    %c0_i32_1 = arith.constant 0 : i32
    return %arg0, %c0_i32, %arg1, %c0_i32_0 : i32, i32, i32, i32
  }
  func.func @transform_6(%arg0: i32, %arg1: i32) -> (i32, i32, i32, i32) {
    %c0_i32 = arith.constant 0 : i32
    %c0_i32_0 = arith.constant 0 : i32
    %c0_i32_1 = arith.constant 0 : i32
    return %arg0, %c0_i32, %arg1, %c0_i32_0 : i32, i32, i32, i32
  }
}

</mosaic_0001>

<bundles_post_ra>
// kernel: tpu_custom_call.1
= control target key start
LH: loop header
LB: loop body
LE: loop exit
PB: predicated region body
PF: predicated region fallthrough
CT: control target
= control target key end

     0   :  { %s1443_s0 = inlined_call_operand.hbm [shape: f32[2,8,32], index: 0, kind: input, shape index: {}]   ;;  %s1444_s1 = inlined_call_operand.vmem [shape: f32[1,32], index: 1, kind: input, shape index: {}]   ;;  %s1445_s2 = inlined_call_operand.vmem [shape: f32[1,32], index: 2, kind: input, shape index: {}]   ;;  %s1446_s3 = inlined_call_operand.hbm [shape: bf16[32,96], index: 3, kind: input, shape index: {}]   ;;  %s1447_s4 = inlined_call_operand.hbm [shape: bf16[2,4,8,8], index: 4, kind: output, shape index: {0}]   ;;  %s1448_s5 = inlined_call_operand.hbm [shape: bf16[2,4,8,8], index: 5, kind: output, shape index: {1}]   ;;  %s1449_s6 = inlined_call_operand.hbm [shape: bf16[2,4,8,8], index: 6, kind: output, shape index: {2}]  }
   0x1   :  { %1454 = sst [smem:[#allocation15_spill]] %s1446_s3 }
   0x2   :  { %12 = vsyncpa [#allocation3], 0 }
   0x3   :  { %14 = vsyncpa [#allocation3 + $0x1], 0 }
   0x4   :  { %15 = vsyncpa [#allocation6], 0 }
   0x5   :  { %16 = vsyncpa [#allocation4], 0 }
   0x6   :  { %18 = vsyncpa [#allocation4 + $0x1], 0 }
   0x7   :  { %19 = vsyncpa [#allocation9], 0 }
   0x8   :  { %21 = vsyncpa [#allocation9 + $0x1], 0  ;;  %s1110_s21 = smov 0   ;;  %s1112_s22 = smov 0  }
   0x9   :  { %s1114_s23 = smov 0   ;;  %s1116_s24 = smov 0  }
   0xa   :  { %s1118_s25 = smov 0   ;;  %s1120_s26 = smov 0  }
   0xb LB: > { %s1141_s27 = sadd.s32 4294967295, %s1052_s26   ;;  %s1453_s28 = sadd.s32 4294967294, %s1052_s26   ;;  %s1052_s26 = sphi %s1120_s26, %s27_s26   ;;  %s1048_s25 = sphi %s1118_s25, %s1476_s25   ;;  %s1044_s24 = sphi %s1116_s24, %s1475_s24   ;;  %s1040_s23 = sphi %s1114_s23, %s1474_s23   ;;  %s1036_s22 = sphi %s1112_s22, %s1473_s22   ;;  %s1032_s21 = sphi %s1110_s21, %s1472_s21  }
   0xc   : > { %p61_p0 = scmp.ne.s32.totalorder %s1036_s22, %s1032_s21  ;;  %p1450_p1 = scmp.eq.s32.totalorder %s1141_s27, 0 }
   0xd   : > { %p156_p3 = scmp.eq.s32.totalorder %s1453_s28, 1  ;;  %p693_p5 = scmp.ge.s32.totalorder %s1052_s26, 1 }
   0xe   : > { %p1152_p4 = por %p1450_p1, %p61_p0  ;;  %p219_p7 = scmp.lt.s32.totalorder %s1052_s26, 3 }
   0xf   : > { %p1157_p6 = por %p156_p3, %p61_p0  ;;  %s1054_s8 = smov [#allocation5]  }
  0x10   : > { %s1455_s29 = scalar_select %p1152_p4, 1, 0 }
  0x11   : > { %s1456_s30 = scalar_select %p1157_p6, 1, 0 }
  0x12   : > { %p1162_p8 = pnand %p693_p5, %p219_p7  ;;  %s237_s9 = sshll.u32 %s1054_s8, 4  ;;  %s238_s9 = int_to_ptr.vmem [resolvable:$true] %s237_s9 }
  0x13   : > { %s39_s11 = sadd.s32 1, %s1048_s25  ;;  %s1459_s3 = sld [smem:[#allocation15_spill]] }
  0x14   : > { %s1457_s7 = scalar_select %p1162_p8, 1, 0 }
  0x15   : > { %p757_p9 = pneg %p1162_p8 }
  0x17   : > { %p1171_p11 = pnand %p757_p9, %p1450_p1 }
  0x19   : > { %s848_s14 = scalar_lea.hbm %s1459_s3, 256  ;;  %p850_p13 = pneg %p1171_p11 }
  0x1a   : > { %p849_p12 = scmp.ne.s32.totalorder %s1459_s3, %s848_s14  ;;  %p855_p5 = scmp.lt.u32.totalorder %s848_s14, %s1459_s3 }
  0x1c   : > { %p851_p0 = pnand %p850_p13, %p849_p12 }
  0x1e   : > { %p852_p3 = pneg %p851_p0 }
  0x20   : > { %p857_p7 = pnand %p855_p5, %p852_p3 }
  0x22   : > { %860 = shalt.err (!%p857_p7)
}
  0x23   : > { %s861_s19 = scalar_lea.vmem %s238_s9, 256  ;;  %p869_p2 = scmp.lt.s32.totalorder %s238_s9, %s238_s9 }
  0x24   : > { %p862_p9 = scmp.ne.s32.totalorder %s238_s9, %s861_s19  ;;  %p870_p6 = scmp.lt.s32.totalorder %s861_s19, %s861_s19 }
  0x26   : > { %p864_p10 = pnand %p862_p9, %p850_p13  ;;  %p871_p4 = por %p870_p6, %p869_p2 }
  0x28   : > { %p865_p1 = pneg %p864_p10 }
  0x2a   : > { %p872_p8 = pnand %p871_p4, %p865_p1 }
  0x2c   : > { %875 = shalt.err (!%p872_p8)
}
  0x2d   : > { %s1055_s20 = smov 64   ;;  %s1056_s8 = smov 4  }
  0x2e   : > { %760 = dma.hbm_to_vmem [thread:$0]  (!%p1171_p11), %s1459_s3, 256, %s238_s9, [#allocation6], %s1055_s20, %s1055_s20, %s1056_s8  }
  0x2f   : > { %p41_p1 = scmp.ge.s32.totalorder %s39_s11, 2  ;;  %s48_s14 = sadd.s32 1, %s1040_s23 }
  0x30   : > { %p55_p2 = scmp.ne.s32.totalorder %s1040_s23, %s1036_s22  ;;  %p56_p4 = scmp.eq.s32.totalorder %s1052_s26, 0 }
  0x31   : > { %s1478_s11 = smov (%p41_p1, %s39_s11), 0  ;;  %p1461_p8 = scmp.eq.s32.totalorder %s1141_s27, 1 }
  0x32   : > { %p1198_p6 = por %p56_p4, %p55_p2  ;;  %s43_s10 = ssub.s32 %s1048_s25, %s1478_s11 }
  0x33   : > { %p1204_p10 = por %p1461_p8, %p55_p2  ;;  %p776_p12 = scmp.lt.s32.totalorder %s1052_s26, 2 }
  0x34   : > { %p46_p11 = scmp.eq.s32.totalorder %s43_s10, 0  ;;  %s251_s9 = sand.u32 1, %s1040_s23  }
  0x35   : > { %s696_s17 = sshll.u32 %s251_s9, 3  ;;  %s697_s19 = sshll.u32 %s1048_s25, 7 }
  0x36   : > { %s1213_s18 = scalar_select %p46_p11, %s1040_s23, %s48_s14  }
  0x37   : > { %s1219_s12 = scalar_lea.hbm %s1443_s0, %s697_s19  ;;  %s255_s13 = scalar_lea.vmem [#allocation2], %s696_s17 }
  0x38   : > { %s263_s28 = sshll.u32 %s255_s13, 4  ;;  %p1225_p13 = pnand %p776_p12, %p1198_p6  ;;  %s1221_s28 = int_to_ptr.vmem [resolvable:$true] %s263_s28 }
  0x39   : > { %s252_s14 = scalar_lea.sflag [#allocation3], %s251_s9  ;;  %s876_s3 = scalar_lea.hbm %s1219_s12, 128 }
  0x3a   : > { %p877_p0 = scmp.ne.s32.totalorder %s1219_s12, %s876_s3  ;;  %p878_p3 = pneg %p1225_p13 }
  0x3b   : > { %s881_s20 = scalar_lea.hbm %s1443_s0, 256  ;;  %p882_p9 = scmp.lt.u32.totalorder %s1219_s12, %s1443_s0 }
  0x3c   : > { %p879_p5 = pnand %p878_p3, %p877_p0  ;;  %p883_p1 = scmp.lt.u32.totalorder %s881_s20, %s876_s3 }
  0x3d   : > { %p885_p4 = scmp.lt.u32.totalorder %s876_s3, %s1219_s12 }
  0x3e   : > { %p880_p7 = pneg %p879_p5  ;;  %p884_p2 = por %p883_p1, %p882_p9 }
  0x40   : > { %p886_p6 = por %p885_p4, %p884_p2 }
  0x42   : > { %p887_p8 = pnand %p886_p6, %p880_p7 }
  0x44   : > { %890 = shalt.err (!%p887_p8)
}
  0x45   : > { %s891_s9 = scalar_lea.vmem %s1221_s28, 128  ;;  %s1057_s13 = smov [#allocation2]  }
  0x46   : > { %p892_p12 = scmp.ne.s32.totalorder %s1221_s28, %s891_s9  ;;  %s896_s17 = sshll.u32 %s1057_s13, 4  ;;  %s897_s17 = int_to_ptr.vmem [resolvable:$false] %s896_s17 }
  0x47   : > { %s898_s19 = scalar_lea.vmem %s897_s17, 256  ;;  %p899_p5 = scmp.lt.s32.totalorder %s1221_s28, %s897_s17 }
  0x48   : > { %p894_p11 = pnand %p892_p12, %p878_p3  ;;  %p900_p9 = scmp.lt.s32.totalorder %s898_s19, %s891_s9 }
  0x4a   : > { %p895_p0 = pneg %p894_p11  ;;  %p901_p1 = por %p900_p9, %p899_p5 }
  0x4c   : > { %p902_p2 = pnand %p901_p1, %p895_p0 }
  0x4e   : > { %905 = shalt.err (!%p902_p2)
}
  0x4f   : > { %764 = dma.hbm_to_vmem [thread:$0]  (!%p1225_p13), %s1219_s12, 128, %s1221_s28, %s252_s14  }
  0x50   : > { %p1464_p7 = scmp.ne.s32.totalorder %s1457_s7, 0 }
  0x51   : > { %s1257_s3 = sand.u32 (!%p1464_p7), 1, %s1036_s22   ;;  %p1465_p3 = scmp.ne.s32.totalorder (!%p1464_p7), %s1455_s29, 0 }
  0x52   : > { %272 = sbr.rel (%p1464_p7) target bundleno = 810 (0x32a), region = 36  ;;  %s699_s20 = sshll.u32 (!%p1464_p7), %s1257_s3, 3 }
  0x53   : > { %s275_s15 = scalar_lea.sflag (!%p1464_p7), [#allocation3], %s1257_s3  ;;  %s278_s8 = scalar_lea.vmem (!%p1464_p7), [#allocation2], %s699_s20 }
  0x59   : > { %1015 = dma.done.wait (%p1465_p3), %s275_s15, 128  }
  0x5a   : > { %1017 = vsyncadd (%p1465_p3), %s275_s15, 4294967168  ;;  %p1466_p4 = scmp.eq.s32.totalorder %s1141_s27, 0 }
  0x5c   : > { %1019 = dma.done.wait (%p1466_p4), [#allocation6], 256   ;;  %p1467_p13 = pmov %p1466_p4 }
  0x5d   : > { %vm325_vm0 = vcmask 261120   ;;  %v322_v0 = vld [vmem:[%s278_s8] sm:$0xff]  ;;  %v844_v7 = vld [vmem:[#allocation5] sm:$0xff]   ;;  %v1058_v8 = vmov 0.0   ;;  %vm1059_vm1 = vmmov 0   ;;  %v845_v9 = vld [vmem:[#allocation5 + $0x8] sm:$0xff]  }
  0x5e   : > { %1021 = vsyncadd (%p1467_p13), [#allocation6], 4294967040  ;;  %v326_v1 = vsel %vm325_vm0, %v322_v0, 0.0  ;;  %737 = vmatprep.subr.bf16.mxu0 %v1058_v8  ;;  %741 = vmatprep.mubr.msk.bf16.mxu0 %vm1059_vm1, %v1058_v8  ;;  %v704_v14 = vld [vmem:[%s1444_s1] ss:$0 sm:$0xff]  ;;  %s1279_s10 = sshll.u32 %s1257_s3, 4 }
  0x5f   : > { %327 = vadd.xlane.f32.xlu0 %v326_v1  ;;  %738 = vmatpush3.bf16.msra.mxu0 %v844_v7  ;;  %v705_v16 = vld [vmem:[%s1445_s2] ss:$0 sm:$0xff]  ;;  %vm415_vm2 = vcmask 60416   ;;  %s1060_s14 = smov 80   ;;  %s1061_s9 = smov 96  }
  0x60   : > { %739 = vmatprep.subr.bf16.mxu0 %v1058_v8  ;;  %s1282_s13 = scalar_lea.vmem [#allocation7], %s1279_s10  ;;  %s1062_s17 = smov 104  }
  0x61   : > { %s1063_s19 = smov 88   ;;  %s1064_s20 = smov 72  }
  0x62   : > { %s1065_s15 = smov 64   ;;  %s1066_s8 = smov 120  }
  0x63   : > { %740 = vmatpush3.bf16.msra.mxu0 %v845_v9  ;;  %s1067_s28 = smov 56   ;;  %s1068_s29 = smov 112  }
  0x64   : > { %s1069_s7 = smov 48   ;;  %s1070_s12 = smov 40  }
  0xec   : > { %v328_v2 = vpop.xlane.xlu0 %327 }
  0xed   : > { %v330_v3 = vmul.f32 0.03125, %v328_v2 }
  0xef   : > { %v331_v4 = vsub.f32 %v322_v0, %v330_v3 }
  0xf1   : > { %v332_v5 = vmul.f32 %v331_v4, %v331_v4 }
  0xf3   : > { %v333_v6 = vsel %vm325_vm0, %v332_v5, 0.0 }
  0xf4   : > { %334 = vadd.xlane.f32.xlu0 %v333_v6 }
 0x181   : > { %v335_v10 = vpop.xlane.xlu0 %334 }
 0x182   : > { %v336_v11 = vmul.f32 0.03125, %v335_v10 }
 0x184   : > { %v337_v12 = vadd.f32 1e-05, %v336_v11 }
 0x186   : > { %846 = vrsqrt.f32 %v337_v12 }
 0x190   : > { %v847_v13 = vpop.eup %846 }
 0x191   : > { %v339_v15 = vmul.f32 %v847_v13, %v331_v4 }
 0x193   : > { %v346_v17 = vmul.f32 %v704_v14, %v339_v15 }
 0x195   : > { %v353_v18 = vadd.f32 %v705_v16, %v346_v17 }
 0x197   : > { %v354_v19 = vpack.c.bf16 %v353_v18, %v353_v18 }
 0x199   : > { %742 = vmatmul.mubr.msk.bf16.vlgmr.msra.gmra.mrb[0].mxu0 %vm325_vm0, %v354_v19 }
 0x26c   : > { %v408_v20 = vpop.f32.mrb[0].mxu0 }
 0x26d   : > { %v414_v21 = vpack.c.bf16 %v408_v20, %v408_v20  ;;  %v743_v22 = vpop.f32.mrb[1].mxu0 }
 0x26e   : > { %v411_v23 = vpop.f32.mrb[2].mxu0 }
 0x26f   : > { %448 = vrot.lane.b32.xlu0 %v414_v21, %s1060_s14  ;;  %420 = vrot.lane.b32.xlu1 %v414_v21, %s1061_s9  ;;  %v744_v24 = vpop.f32.mrb[3].mxu0  ;;  %416 = vst.msk [vmem:[%s1282_s13] sm:$0xf] %vm415_vm2, %v414_v21  ;;  %s313_s14 = scalar_lea.vmem [#allocation8], %s1279_s10 }
 0x270   : > { %s515_s9 = sshll.u32 %s313_s14, 4  ;;  %s1297_s9 = int_to_ptr.vmem [resolvable:$true] %s515_s9 }
 0x273   : > { %458 = vrot.lane.b32.xlu0 %v414_v21, %s1062_s17  ;;  %433 = vrot.lane.b32.xlu1 %v414_v21, %s1063_s19  ;;  %s478_s17 = sand.u32 1, %s1141_s27   ;;  %s1292_s19 = sshll.u32 %s1044_s24, 8 }
 0x274   : > { %s1306_s24 = scalar_lea.sflag [#allocation9], %s478_s17  ;;  %s906_s27 = scalar_lea.vmem %s1297_s9, 256 }
 0x275   : > { %p907_p6 = scmp.ne.s32.totalorder %s1297_s9, %s906_s27 }
 0x277   : > { %463 = vrot.lane.b32.xlu1 %v414_v21, %s1064_s20  ;;  %p908_p8 = pnand %p907_p6, %p1204_p10 }
 0x279   : > { %p909_p12 = pneg %p908_p8 }
 0x27b   : > { %424 = vrot.lane.b32.xlu1 %v414_v21, %s1065_s15 }
 0x27f   : > { %428 = vrot.lane.b32.xlu1 %v414_v21, %s1066_s8 }
 0x283   : > { %438 = vrot.lane.b32.xlu1 %v414_v21, %s1067_s28  ;;  %s1303_s28 = scalar_lea.hbm %s1448_s5, %s1292_s19 }
 0x287   : > { %443 = vrot.lane.b32.xlu1 %v414_v21, %s1068_s29  ;;  %s1071_s29 = smov [#allocation8]  }
 0x28b   : > { %453 = vrot.lane.b32.xlu1 %v414_v21, %s1069_s7  ;;  %s910_s7 = sshll.u32 %s1071_s29, 4  ;;  %s911_s7 = int_to_ptr.vmem [resolvable:$false] %s910_s7 }
 0x28c   : > { %p913_p11 = scmp.lt.s32.totalorder %s1297_s9, %s911_s7 }
 0x28f   : > { %468 = vrot.lane.b32.xlu1 %v414_v21, %s1070_s12  ;;  %s912_s12 = scalar_lea.vmem %s911_s7, 512 }
 0x290   : > { %p914_p0 = scmp.lt.s32.totalorder %s912_s12, %s906_s27 }
 0x292   : > { %p915_p5 = por %p914_p0, %p913_p11 }
 0x294   : > { %p916_p9 = pnand %p915_p5, %p909_p12 }
 0x2e1   : > { %v449_v25 = vpop.permute.xlu0 %448  ;;  %v421_v26 = vpop.permute.xlu1 %420 }
 0x2e2   : > { %714 = vst.msk [vmem:[%s313_s14 + $0x8] sm:$0xf] %vm415_vm2, %v449_v25  ;;  %423 = vst.msk [vmem:[%s313_s14] sm:$0xf] %vm415_vm2, %v421_v26 }
 0x2e5   : > { %v459_v27 = vpop.permute.xlu0 %458  ;;  %v434_v28 = vpop.permute.xlu1 %433 }
 0x2e6   : > { %716 = vst.msk [vmem:[%s1282_s13 + $0xc] sm:$0xf] %vm415_vm2, %v459_v27  ;;  %711 = vst.msk [vmem:[%s313_s14 + $0x4] sm:$0xf] %vm415_vm2, %v434_v28 }
 0x2e9   : > { %v464_v29 = vpop.permute.xlu1 %463 }
 0x2ea   : > { %717 = vst.msk [vmem:[%s313_s14 + $0xc] sm:$0xf] %vm415_vm2, %v464_v29 }
 0x2eb   : > { %919 = shalt.err (!%p916_p9)
}
 0x2ec   : > { %s920_s14 = scalar_lea.hbm %s1303_s28, 256  ;;  %s924_s8 = scalar_lea.hbm %s1448_s5, 512 }
 0x2ed   : > { %p921_p1 = scmp.ne.s32.totalorder %s1303_s28, %s920_s14  ;;  %p925_p3 = scmp.lt.u32.totalorder %s1303_s28, %s1448_s5 }
 0x2ee   : > { %p926_p4 = scmp.lt.u32.totalorder %s924_s8, %s920_s14  ;;  %p928_p6 = scmp.lt.u32.totalorder %s920_s14, %s1303_s28 }
 0x2ef   : > { %p922_p2 = pnand %p921_p1, %p1204_p10 }
 0x2f0   : > { %p927_p13 = por %p926_p4, %p925_p3 }
 0x2f1   : > { %p923_p7 = pneg %p922_p2 }
 0x2f2   : > { %p929_p8 = por %p928_p6, %p927_p13 }
 0x2f4   : > { %p930_p12 = pnand %p929_p8, %p923_p7 }
 0x2f6   : > { %933 = shalt.err (!%p930_p12)
}
 0x2f7   : > { %s1072_s27 = smov 4   ;;  %v425_v30 = vpop.permute.xlu1 %424  ;;  %s1334_s12 = scalar_lea.vmem [#allocation10], %s1279_s10 }
 0x2f8   : > { %752 = dma.vmem_to_hbm [thread:$0]  (%p1204_p10), %s1297_s9, 256, %s1303_s28, %s1306_s24, %s1065_s15, %s1065_s15, %s1072_s27  }
 0x2f9   : > { %427 = vst.msk [vmem:[%s1334_s12] sm:$0xf] %vm415_vm2, %v425_v30  ;;  %s498_s14 = sshll.u32 %s1282_s13, 4  ;;  %s1349_s10 = scalar_lea.hbm %s1447_s4, %s1292_s19  ;;  %s1343_s14 = int_to_ptr.vmem [resolvable:$true] %s498_s14 }
 0x2fa   : > { %s934_s28 = scalar_lea.vmem %s1343_s14, 256  ;;  %s1073_s8 = smov [#allocation7]  }
 0x2fb   : > { %v429_v31 = vpop.permute.xlu1 %428  ;;  %p935_p11 = scmp.ne.s32.totalorder %s1343_s14, %s934_s28  ;;  %s938_s29 = sshll.u32 %s1073_s8, 4  ;;  %s939_s29 = int_to_ptr.vmem [resolvable:$false] %s938_s29 }
 0x2fc   : > { %710 = vst.msk [vmem:[%s1282_s13 + $0x4] sm:$0xf] %vm415_vm2, %v429_v31  ;;  %s940_s7 = scalar_lea.vmem %s939_s29, 512  ;;  %p941_p9 = scmp.lt.s32.totalorder %s1343_s14, %s939_s29 }
 0x2fd   : > { %p936_p0 = pnand %p935_p11, %p1204_p10  ;;  %p942_p1 = scmp.lt.s32.totalorder %s940_s7, %s934_s28 }
 0x2ff   : > { %v439_v32 = vpop.permute.xlu1 %438  ;;  %p937_p5 = pneg %p936_p0  ;;  %p943_p2 = por %p942_p1, %p941_p9 }
 0x300   : > { %712 = vst.msk [vmem:[%s1334_s12 + $0x4] sm:$0xf] %vm415_vm2, %v439_v32 }
 0x301   : > { %p944_p7 = pnand %p943_p2, %p937_p5 }
 0x303   : > { %v444_v33 = vpop.permute.xlu1 %443 }
 0x304   : > { %713 = vst.msk [vmem:[%s1282_s13 + $0x8] sm:$0xf] %vm415_vm2, %v444_v33 }
 0x305   : > { %947 = shalt.err (!%p944_p7)
}
 0x306   : > { %s948_s13 = scalar_lea.hbm %s1349_s10, 256  ;;  %s952_s8 = scalar_lea.hbm %s1447_s4, 512 }
 0x307   : > { %p949_p3 = scmp.ne.s32.totalorder %s1349_s10, %s948_s13  ;;  %p953_p6 = scmp.lt.u32.totalorder %s1349_s10, %s1447_s4 }
 0x308   : > { %p954_p8 = scmp.lt.u32.totalorder %s952_s8, %s948_s13  ;;  %p956_p11 = scmp.lt.u32.totalorder %s948_s13, %s1349_s10 }
 0x309   : > { %p950_p4 = pnand %p949_p3, %p1204_p10 }
 0x30a   : > { %p955_p12 = por %p954_p8, %p953_p6 }
 0x30b   : > { %p951_p13 = pneg %p950_p4 }
 0x30c   : > { %p957_p0 = por %p956_p11, %p955_p12 }
 0x30e   : > { %p958_p5 = pnand %p957_p0, %p951_p13 }
 0x310   : > { %961 = shalt.err (!%p958_p5)
}
 0x311   : > { %s1468_s28 = scalar_lea.sflag [#allocation4], %s1257_s3  ;;  %s532_s9 = sshll.u32 %s1334_s12, 4  ;;  %v454_v34 = vpop.permute.xlu1 %453  ;;  %s1383_s9 = int_to_ptr.vmem [resolvable:$true] %s532_s9 }
 0x312   : > { %751 = dma.vmem_to_hbm [thread:$0]  (%p1204_p10), %s1343_s14, 256, %s1349_s10, %s1468_s28, %s1065_s15, %s1065_s15, %s1072_s27  }
 0x313   : > { %715 = vst.msk [vmem:[%s1334_s12 + $0x8] sm:$0xf] %vm415_vm2, %v454_v34  ;;  %s1389_s3 = scalar_lea.hbm %s1449_s6, %s1292_s19  ;;  %s962_s17 = scalar_lea.vmem %s1383_s9, 256 }
 0x314   : > { %p963_p9 = scmp.ne.s32.totalorder %s1383_s9, %s962_s17  ;;  %s1074_s14 = smov [#allocation10]  }
 0x315   : > { %v469_v35 = vpop.permute.xlu1 %468  ;;  %s966_s10 = sshll.u32 %s1074_s14, 4  ;;  %s967_s10 = int_to_ptr.vmem [resolvable:$false] %s966_s10 }
 0x316   : > { %718 = vst.msk [vmem:[%s1334_s12 + $0xc] sm:$0xf] %vm415_vm2, %v469_v35  ;;  %p964_p1 = pnand %p963_p9, %p1204_p10  ;;  %s968_s20 = scalar_lea.vmem %s967_s10, 512 }
 0x317   : > { %p969_p7 = scmp.lt.s32.totalorder %s1383_s9, %s967_s10  ;;  %p970_p3 = scmp.lt.s32.totalorder %s968_s20, %s962_s17 }
 0x318   : > { %p965_p2 = pneg %p964_p1 }
 0x319   : > { %p971_p4 = por %p970_p3, %p969_p7 }
 0x31b   : > { %p972_p13 = pnand %p971_p4, %p965_p2 }
 0x31d   : > { %975 = shalt.err (!%p972_p13)
}
 0x31e   : > { %s976_s19 = scalar_lea.hbm %s1389_s3, 256  ;;  %s980_s29 = scalar_lea.hbm %s1449_s6, 512 }
 0x31f   : > { %p977_p6 = scmp.ne.s32.totalorder %s1389_s3, %s976_s19  ;;  %p981_p11 = scmp.lt.u32.totalorder %s1389_s3, %s1449_s6 }
 0x320   : > { %p982_p0 = scmp.lt.u32.totalorder %s980_s29, %s976_s19  ;;  %p984_p9 = scmp.lt.u32.totalorder %s976_s19, %s1389_s3 }
 0x321   : > { %p978_p8 = pnand %p977_p6, %p1204_p10 }
 0x322   : > { %p983_p5 = por %p982_p0, %p981_p11 }
 0x323   : > { %p979_p12 = pneg %p978_p8 }
 0x324   : > { %p985_p1 = por %p984_p9, %p983_p5 }
 0x326   : > { %p986_p2 = pnand %p985_p1, %p979_p12 }
 0x328   : > { %989 = shalt.err (!%p986_p2)
}
 0x329   : > { %753 = dma.vmem_to_hbm [thread:$0]  (%p1204_p10), %s1383_s9, 256, %s1389_s3, %s1306_s24, %s1065_s15, %s1065_s15, %s1072_s27  }
 0x32a PF: > { %s547_s13 = sand.u32 1, %s1032_s21   ;;  %p1469_p7 = scmp.ne.s32.totalorder %s1456_s30, 0 }
 0x32b   : > { %p1470_p3 = scmp.ge.s32.totalorder %s1052_s26, 2  ;;  %s548_s17 = scalar_lea.sflag [#allocation4], %s547_s13 }
 0x32d   : > { %p766_p4 = pnand %p1470_p3, %p1469_p7 }
 0x32f   : > { %1023 = dma.done.wait (!%p766_p4), %s548_s17, 256  }
 0x330   : > { %1025 = vsyncadd (!%p766_p4), %s548_s17, 4294967040  ;;  %s1471_s16 = sadd.s32 4294967294, %s1052_s26  }
 0x331   : > { %s556_s14 = sand.u32 1, %s1471_s16  }
 0x332   : > { %s557_s10 = scalar_lea.sflag [#allocation9], %s556_s14 }
 0x333   : > { %1027 = dma.done.wait (!%p766_p4), %s557_s10, 512  }
 0x334   : > { %1029 = vsyncadd (!%p766_p4), %s557_s10, 4294966784  ;;  %s27_s26 = sadd.s32 1, %s1052_s26   ;;  %s1472_s21 = smov %s1036_s22 }
 0x335   : > { %p24_p10 = scmp.ge.s32.totalorder %s27_s26, 4   ;;  %s1473_s22 = smov %s1040_s23 }
 0x336   : > { %s1474_s23 = smov %s1213_s18  ;;  %s1475_s24 = smov %s1048_s25 }
 0x337   : > { %s1476_s25 = smov %s1478_s11  ;;  %26 = sbr.rel (!%p24_p10) target bundleno = 11 (0xb), region = 126 }
 0x33e   :  { %571 = vsyncpa [#allocation3], 1 }
 0x33f   :  { %573 = vsyncpa [#allocation3 + $0x1], 1 }
 0x340   :  { %574 = vsyncpa [#allocation6], 1 }
 0x341   :  { %575 = vsyncpa [#allocation4], 1 }
 0x342   :  { %577 = vsyncpa [#allocation4 + $0x1], 1 }
 0x343   :  { %578 = vsyncpa [#allocation9], 1 }
 0x344   :  { %580 = vsyncpa [#allocation9 + $0x1], 1 }

</bundles_post_ra>
